<compile_context>
chip_gen: v7x
topology: tpu7x:2x2x1
jax: 0.10.0
libtpu: 0.0.40
codegen_flags: <defaults>
</compile_context>

<pallas_src>
import functools
import math

import jax
import jax.numpy as jnp
from jax.experimental import pallas as pl
from jax.experimental.pallas import tpu as pltpu


def _asym_stats_kernel(x_ref, y_ref, s0_ref, s1_ref, s2_ref, *,
                       from_labels, square, needs_mask,
                       n_valid, tile_n, tiles_per_par):
    """Accumulate per-(batch, class) statistics over the spatial grid axis.

    x_ref : (B, C, tile_n) network output block (native dtype, upcast here).
    y_ref : (B, 1, tile_n) int32 label block      (from_labels=True)
            (B, C, tile_n) one-hot / soft target  (from_labels=False)
    s*_ref: (1, B, C) f32 accumulators, resident across grid axis 1.
       square=False: s0 = sum(x),        s1 = sum(y),        s2 = sum(x*y)
       square=True : s0 = sum((x-xy)^2), s1 = sum((y-xy)^2), s2 = sum((xy)^2)
    """
    @pl.when(pl.program_id(1) == 0)
    def _init():
        s0_ref[...] = jnp.zeros_like(s0_ref)
        s1_ref[...] = jnp.zeros_like(s1_ref)
        s2_ref[...] = jnp.zeros_like(s2_ref)

    x = x_ref[...].astype(jnp.float32)                       # (B, C, tn)
    shp = x.shape

    if from_labels:
        # One-hot built on-chip: compare the broadcast label map against a
        # per-sublane class id.
        lab = jnp.broadcast_to(y_ref[...], shp)               # (B, C, tn) i32
        cls = jax.lax.broadcasted_iota(jnp.int32, shp, 1)
        y = (lab == cls).astype(jnp.float32)
    else:
        y = y_ref[...].astype(jnp.float32)

    if needs_mask:
        # Zero out lanes past the true spatial extent (ragged last tile and
        # any tail tiles of the parallel split). OOB reads are garbage but
        # are fully masked here.
        n_block = pl.program_id(0) * tiles_per_par + pl.program_id(1)
        lane = jax.lax.broadcasted_iota(jnp.int32, shp, 2)
        mask = ((lane + n_block * tile_n) < n_valid).astype(jnp.float32)
        x = x * mask
        y = y * mask

    xy = x * y
    if square:
        fp = x - xy
        fn = y - xy
        s0_ref[...] += jnp.sum(fp * fp, axis=-1)[None]
        s1_ref[...] += jnp.sum(fn * fn, axis=-1)[None]
        s2_ref[...] += jnp.sum(xy * xy, axis=-1)[None]
    else:
        s0_ref[...] += jnp.sum(x, axis=-1)[None]
        s1_ref[...] += jnp.sum(y, axis=-1)[None]
        s2_ref[...] += jnp.sum(xy, axis=-1)[None]


def asym_loss(x, y, loss_mask=None, *, apply_nonlin=None, batch_dice=False,
              do_bg=True, smooth=1.0, square=False,
              target_block_bytes=2 * 1024 * 1024):
    """AsymLoss.forward.  x: (B, C, *spatial).  y: a label map of shape
    (B, *spatial) / (B, 1, *spatial) or a one-hot/soft target with x's shape.
    Returns a scalar f32 loss."""
    if loss_mask is not None:
        # TODO(synk): masked tp/fp/fn (loss_mask) path not implemented.
        raise NotImplementedError(
            "loss_mask is not supported by the Pallas AsymLoss kernel")

    B, C = int(x.shape[0]), int(x.shape[1])
    N = int(math.prod(x.shape[2:]))

    if apply_nonlin is not None:
        # TODO(synk): fuse sigmoid-like nonlinearities into the kernel body
        # (the EUP slot is idle); softmax fusion is possible since the class
        # dim is kept whole inside each block.
        x = apply_nonlin(x)

    x3 = x.reshape(B, C, N)                          # metadata-only reshape

    from_labels = tuple(y.shape) != tuple(x.shape)
    if from_labels:
        # Label map (B, *spatial) or (B, 1, *spatial) -> (B, 1, N) int32.
        y_in = y.astype(jnp.int32).reshape(B, 1, N)
        y_col_bytes = B * 4
    else:
        y_in = y.reshape(B, C, N)
        y_col_bytes = B * C * y_in.dtype.itemsize

    # --- spatial tiling ---------------------------------------------------
    col_bytes = B * C * x3.dtype.itemsize + y_col_bytes   # bytes per spatial idx
    if N * col_bytes <= target_block_bytes or N < 128:
        tile_n, n_tiles = N, 1                     # single block == full dim
    else:
        tile_n = max(128, (target_block_bytes // col_bytes) // 128 * 128)
        n_tiles = (N + tile_n - 1) // tile_n
    # Give v7x's two TensorCores a real parallel axis when we can do so
    # without creating fully out-of-bounds blocks (even tile count).
    n_par = 2 if (n_tiles >= 2 and n_tiles % 2 == 0) else 1
    tiles_per_par = n_tiles // n_par
    needs_mask = (N % tile_n) != 0

    kernel = functools.partial(
        _asym_stats_kernel, from_labels=from_labels, square=square,
        needs_mask=needs_mask, n_valid=N, tile_n=tile_n,
        tiles_per_par=tiles_per_par)

    spatial_idx = lambda p, n: (0, 0, p * tiles_per_par + n)
    x_spec = pl.BlockSpec((B, C, tile_n), spatial_idx)
    y_spec = pl.BlockSpec((B, 1 if from_labels else C, tile_n), spatial_idx)
    out_spec = pl.BlockSpec((1, B, C), lambda p, n: (p, 0, 0))

    s0, s1, s2 = pl.pallas_call(
        kernel,
        out_shape=[jax.ShapeDtypeStruct((n_par, B, C), jnp.float32)] * 3,
        grid=(n_par, tiles_per_par),
        in_specs=[x_spec, y_spec],
        out_specs=[out_spec, out_spec, out_spec],
        compiler_params=pltpu.CompilerParams(
            dimension_semantics=("parallel", "arbitrary")),
    )(x3, y_in)

    # Combine the tiny per-par partial sums.
    s0 = s0.sum(axis=0)
    s1 = s1.sum(axis=0)
    s2 = s2.sum(axis=0)

    if square:
        tp, fp, fn = s2, s0, s1
    else:
        tp, fp, fn = s2, s0 - s2, s1 - s2

    if batch_dice:
        tp, fp, fn = tp.sum(axis=0), fp.sum(axis=0), fn.sum(axis=0)

    beta = 1.5
    weight = beta * beta / (1.0 + beta * beta)
    asym = (tp + smooth) / (tp + weight * fn + (1.0 - weight) * fp + smooth)

    if not do_bg:
        asym = asym[1:] if batch_dice else asym[:, 1:]
    return -jnp.mean(asym)


def _reference_asym_loss(x, y, *, batch_dice=False, do_bg=True, smooth=1.0,
                         square=False):
    """Plain-JAX mirror of PyTorch AsymLoss.forward (apply_nonlin=None)."""
    B, C = x.shape[0], x.shape[1]
    x = x.astype(jnp.float32)
    if y.shape != x.shape:
        lab = y
        if lab.ndim == x.ndim:
            lab = lab[:, 0]
        y = jnp.moveaxis(
            jax.nn.one_hot(lab.astype(jnp.int32), C, dtype=jnp.float32), -1, 1)
    else:
        y = y.astype(jnp.float32)
    axes = tuple(range(2, x.ndim))
    tp = x * y
    fp = x * (1.0 - y)
    fn = (1.0 - x) * y
    if square:
        tp, fp, fn = tp ** 2, fp ** 2, fn ** 2
    tp, fp, fn = tp.sum(axes), fp.sum(axes), fn.sum(axes)
    if batch_dice:
        tp, fp, fn = tp.sum(0), fp.sum(0), fn.sum(0)
    beta = 1.5
    w = beta * beta / (1.0 + beta * beta)
    asym = (tp + smooth) / (tp + w * fn + (1.0 - w) * fp + smooth)
    if not do_bg:
        asym = asym[1:] if batch_dice else asym[:, 1:]
    return -asym.mean()


if __name__ == "__main__":
    key = jax.random.PRNGKey(0)
    k1, k2, k3 = jax.random.split(key, 3)

    B, C, H, W = 2, 4, 16, 16
    x = jax.random.uniform(k1, (B, C, H, W), dtype=jnp.float32)
    labels = jax.random.randint(k2, (B, H, W), 0, C)       # label-map path

    # 1) default flags, label-map target
    loss = jax.block_until_ready(jax.jit(asym_loss)(x, labels))
    ref = _reference_asym_loss(x, labels)
    assert jnp.isfinite(loss), "loss is not finite"
    assert jnp.allclose(loss, ref, rtol=1e-5, atol=1e-5), (loss, ref)

    # 2) same-shape (soft) target, batch_dice=True, do_bg=False
    y_soft = jax.random.uniform(k3, (B, C, H, W), dtype=jnp.float32)
    f2 = jax.jit(functools.partial(asym_loss, batch_dice=True, do_bg=False))
    loss2 = jax.block_until_ready(f2(x, y_soft))
    ref2 = _reference_asym_loss(x, y_soft, batch_dice=True, do_bg=False)
    assert jnp.allclose(loss2, ref2, rtol=1e-5, atol=1e-5), (loss2, ref2)

    # 3) square=True, label map given with an explicit channel dim
    f3 = jax.jit(functools.partial(asym_loss, square=True))
    loss3 = jax.block_until_ready(f3(x, labels[:, None]))
    ref3 = _reference_asym_loss(x, labels[:, None], square=True)
    assert jnp.allclose(loss3, ref3, rtol=1e-5, atol=1e-5), (loss3, ref3)

    print("KERNEL_OK")
</pallas_src>

<mosaic_0001>
module attributes {stable_mosaic.version = 11 : i64} {
  func.func @_asym_stats_kernel(%arg0: i32, %arg1: i32, %arg2: memref<2x4x256xf32, #tpu.memory_space<vmem>>, %arg3: memref<2x1x256xi32, #tpu.memory_space<vmem>>, %arg4: memref<1x2x4xf32, #tpu.memory_space<vmem>>, %arg5: memref<1x2x4xf32, #tpu.memory_space<vmem>>, %arg6: memref<1x2x4xf32, #tpu.memory_space<vmem>>) attributes {dimension_semantics = [#tpu.dimension_semantics<parallel>, #tpu.dimension_semantics<arbitrary>], iteration_bounds = array<i64: 1, 1>, scalar_prefetch = 0 : i64, scratch_operands = 0 : i64, tpu.core_type = #tpu.core_type<tc>, window_params = [{transform_indices = @transform_0, window_bounds = array<i64: 2, 4, 256>}, {transform_indices = @transform_1, window_bounds = array<i64: 2, 1, 256>}, {transform_indices = @transform_2, window_bounds = array<i64: 1, 2, 4>}, {transform_indices = @transform_3, window_bounds = array<i64: 1, 2, 4>}, {transform_indices = @transform_4, window_bounds = array<i64: 1, 2, 4>}]} {
    %c0_i32 = arith.constant 0 : i32
    %0 = arith.cmpi eq, %arg1, %c0_i32 : i32
    %1 = arith.extui %0 : i1 to i32
    %c0_i32_0 = arith.constant 0 : i32
    %2 = arith.cmpi ne, %1, %c0_i32_0 : i32
    scf.if %2 {
      %cst_26 = arith.constant 0.000000e+00 : f32
      %27 = vector.broadcast %cst_26 : f32 to vector<1x2x4xf32>
      %c0_27 = arith.constant 0 : index
      %c0_28 = arith.constant 0 : index
      %c0_29 = arith.constant 0 : index
      %28 = vector.load %arg4[%c0_27, %c0_28, %c0_29] : memref<1x2x4xf32, #tpu.memory_space<vmem>>, vector<1x2x4xf32>
      tpu.vector_store %arg4[%c0_27, %c0_28, %c0_29], %27 {strides = array<i32>} : memref<1x2x4xf32, #tpu.memory_space<vmem>>, vector<1x2x4xf32>,
      %cst_30 = arith.constant 0.000000e+00 : f32
      %29 = vector.broadcast %cst_30 : f32 to vector<1x2x4xf32>
      %c0_31 = arith.constant 0 : index
      %c0_32 = arith.constant 0 : index
      %c0_33 = arith.constant 0 : index
      %30 = vector.load %arg5[%c0_31, %c0_32, %c0_33] : memref<1x2x4xf32, #tpu.memory_space<vmem>>, vector<1x2x4xf32>
      tpu.vector_store %arg5[%c0_31, %c0_32, %c0_33], %29 {strides = array<i32>} : memref<1x2x4xf32, #tpu.memory_space<vmem>>, vector<1x2x4xf32>,
      %cst_34 = arith.constant 0.000000e+00 : f32
      %31 = vector.broadcast %cst_34 : f32 to vector<1x2x4xf32>
      %c0_35 = arith.constant 0 : index
      %c0_36 = arith.constant 0 : index
      %c0_37 = arith.constant 0 : index
      %32 = vector.load %arg6[%c0_35, %c0_36, %c0_37] : memref<1x2x4xf32, #tpu.memory_space<vmem>>, vector<1x2x4xf32>
      tpu.vector_store %arg6[%c0_35, %c0_36, %c0_37], %31 {strides = array<i32>} : memref<1x2x4xf32, #tpu.memory_space<vmem>>, vector<1x2x4xf32>,
    } else {
    }
    %c0 = arith.constant 0 : index
    %c0_1 = arith.constant 0 : index
    %c0_2 = arith.constant 0 : index
    %3 = vector.load %arg2[%c0, %c0_1, %c0_2] : memref<2x4x256xf32, #tpu.memory_space<vmem>>, vector<2x4x256xf32>
    %c0_3 = arith.constant 0 : index
    %c0_4 = arith.constant 0 : index
    %c0_5 = arith.constant 0 : index
    %4 = vector.load %arg3[%c0_3, %c0_4, %c0_5] : memref<2x1x256xi32, #tpu.memory_space<vmem>>, vector<2x1x256xi32>
    %5 = vector.shape_cast %4 : vector<2x1x256xi32> to vector<2x1x256xi32>
    %6 = vector.broadcast %5 : vector<2x1x256xi32> to vector<2x4x256xi32>
    %7 = tpu.iota {dimensions = array<i32: 1>} : vector<2x4x256xi32>
    %8 = arith.cmpi eq, %6, %7 : vector<2x4x256xi32>
    %9 = arith.extui %8 : vector<2x4x256xi1> to vector<2x4x256xi32>
    %10 = arith.sitofp %9 : vector<2x4x256xi32> to vector<2x4x256xf32>
    %11 = arith.mulf %3, %10 : vector<2x4x256xf32>
    %c0_6 = arith.constant 0 : index
    %c0_7 = arith.constant 0 : index
    %c0_8 = arith.constant 0 : index
    %12 = vector.load %arg4[%c0_6, %c0_7, %c0_8] : memref<1x2x4xf32, #tpu.memory_space<vmem>>, vector<1x2x4xf32>
    %cst = arith.constant dense<0.000000e+00> : vector<2x4xf32>
    %13 = vector.multi_reduction <add>, %3, %cst [2] : vector<2x4x256xf32> to vector<2x4xf32>
    %14 = vector.shape_cast %13 : vector<2x4xf32> to vector<1x2x4xf32>
    %15 = arith.addf %12, %14 : vector<1x2x4xf32>
    %c0_9 = arith.constant 0 : index
    %c0_10 = arith.constant 0 : index
    %c0_11 = arith.constant 0 : index
    %16 = vector.load %arg4[%c0_9, %c0_10, %c0_11] : memref<1x2x4xf32, #tpu.memory_space<vmem>>, vector<1x2x4xf32>
    tpu.vector_store %arg4[%c0_9, %c0_10, %c0_11], %15 {strides = array<i32>} : memref<1x2x4xf32, #tpu.memory_space<vmem>>, vector<1x2x4xf32>,
    %c0_12 = arith.constant 0 : index
    %c0_13 = arith.constant 0 : index
    %c0_14 = arith.constant 0 : index
    %17 = vector.load %arg5[%c0_12, %c0_13, %c0_14] : memref<1x2x4xf32, #tpu.memory_space<vmem>>, vector<1x2x4xf32>
    %cst_15 = arith.constant dense<0.000000e+00> : vector<2x4xf32>
    %18 = vector.multi_reduction <add>, %10, %cst_15 [2] : vector<2x4x256xf32> to vector<2x4xf32>
    %19 = vector.shape_cast %18 : vector<2x4xf32> to vector<1x2x4xf32>
    %20 = arith.addf %17, %19 : vector<1x2x4xf32>
    %c0_16 = arith.constant 0 : index
    %c0_17 = arith.constant 0 : index
    %c0_18 = arith.constant 0 : index
    %21 = vector.load %arg5[%c0_16, %c0_17, %c0_18] : memref<1x2x4xf32, #tpu.memory_space<vmem>>, vector<1x2x4xf32>
    tpu.vector_store %arg5[%c0_16, %c0_17, %c0_18], %20 {strides = array<i32>} : memref<1x2x4xf32, #tpu.memory_space<vmem>>, vector<1x2x4xf32>,
    %c0_19 = arith.constant 0 : index
    %c0_20 = arith.constant 0 : index
    %c0_21 = arith.constant 0 : index
    %22 = vector.load %arg6[%c0_19, %c0_20, %c0_21] : memref<1x2x4xf32, #tpu.memory_space<vmem>>, vector<1x2x4xf32>
    %cst_22 = arith.constant dense<0.000000e+00> : vector<2x4xf32>
    %23 = vector.multi_reduction <add>, %11, %cst_22 [2] : vector<2x4x256xf32> to vector<2x4xf32>
    %24 = vector.shape_cast %23 : vector<2x4xf32> to vector<1x2x4xf32>
    %25 = arith.addf %22, %24 : vector<1x2x4xf32>
    %c0_23 = arith.constant 0 : index
    %c0_24 = arith.constant 0 : index
    %c0_25 = arith.constant 0 : index
    %26 = vector.load %arg6[%c0_23, %c0_24, %c0_25] : memref<1x2x4xf32, #tpu.memory_space<vmem>>, vector<1x2x4xf32>
    tpu.vector_store %arg6[%c0_23, %c0_24, %c0_25], %25 {strides = array<i32>} : memref<1x2x4xf32, #tpu.memory_space<vmem>>, vector<1x2x4xf32>,
    return
  }
  func.func @transform_0(%arg0: i32, %arg1: i32) -> (i32, i32, i32) {
    %c1_i32 = arith.constant 1 : i32
    %0 = arith.muli %arg0, %c1_i32 : i32
    %1 = arith.addi %0, %arg1 : i32
    %c0_i32 = arith.constant 0 : i32
    %c0_i32_0 = arith.constant 0 : i32
    %c0_i32_1 = arith.constant 0 : i32
    return %c0_i32, %c0_i32_0, %1 : i32, i32, i32
  }
  func.func @transform_1(%arg0: i32, %arg1: i32) -> (i32, i32, i32) {
    %c1_i32 = arith.constant 1 : i32
    %0 = arith.muli %arg0, %c1_i32 : i32
    %1 = arith.addi %0, %arg1 : i32
    %c0_i32 = arith.constant 0 : i32
    %c0_i32_0 = arith.constant 0 : i32
    %c0_i32_1 = arith.constant 0 : i32
    return %c0_i32, %c0_i32_0, %1 : i32, i32, i32
  }
  func.func @transform_2(%arg0: i32, %arg1: i32) -> (i32, i32, i32) {
    %c0_i32 = arith.constant 0 : i32
    %c0_i32_0 = arith.constant 0 : i32
    %c0_i32_1 = arith.constant 0 : i32
    return %arg0, %c0_i32, %c0_i32_0 : i32, i32, i32
  }
  func.func @transform_3(%arg0: i32, %arg1: i32) -> (i32, i32, i32) {
    %c0_i32 = arith.constant 0 : i32
    %c0_i32_0 = arith.constant 0 : i32
    %c0_i32_1 = arith.constant 0 : i32
    return %arg0, %c0_i32, %c0_i32_0 : i32, i32, i32
  }
  func.func @transform_4(%arg0: i32, %arg1: i32) -> (i32, i32, i32) {
    %c0_i32 = arith.constant 0 : i32
    %c0_i32_0 = arith.constant 0 : i32
    %c0_i32_1 = arith.constant 0 : i32
    return %arg0, %c0_i32, %c0_i32_0 : i32, i32, i32
  }
}

</mosaic_0001>

<bundles_post_ra>
// kernel: asym_loss.1
= control target key start
LH: loop header
LB: loop body
LE: loop exit
PB: predicated region body
PF: predicated region fallthrough
CT: control target
= control target key end

     0   :  { %vm114_vm0 = vcmask 1043456   ;;  %v67_v0 = vlaneseq  ;;  %v227_v22 = vmov 0.0   ;;  %vm59_vm5 = vcmask 25600   ;;  %s321_s0 = inlined_call_operand.vmem [shape: f32[2,4,256], index: 0, kind: input, shape index: {}]   ;;  %s322_s1 = inlined_call_operand.vmem [shape: s32[2,1,256], index: 1, kind: input, shape index: {}]   ;;  %s323_s2 = inlined_call_operand.vmem [shape: f32[1,2,4], index: 2, kind: output, shape index: {0}]   ;;  %s324_s3 = inlined_call_operand.vmem [shape: f32[1,2,4], index: 3, kind: output, shape index: {1}]   ;;  %s325_s4 = inlined_call_operand.vmem [shape: f32[1,2,4], index: 4, kind: output, shape index: {2}]  }
   0x1   :  { %v63_v1 = vld [vmem:[%s321_s0] sm:$0xff]  ;;  %v64_v2 = vld [vmem:[%s321_s0 + $0x8] sm:$0xff]  ;;  %60 = vst.msk [vmem:[%s323_s2] sm:$0x3] %vm59_vm5, %v227_v22  ;;  %61 = vst.msk [vmem:[%s324_s3] sm:$0x3] %vm59_vm5, %v227_v22 }
   0x2   :  { %v110_v3 = vcombine.high %v63_v1, %v63_v1  ;;  %v115_v4 = vsel %vm114_vm0, %v63_v1, 0.0  ;;  %v68_v5 = vshrl.u32 %v67_v0, 7  ;;  %v111_v6 = vcombine.high %v64_v2, %v64_v2  ;;  %v65_v7 = vld [vmem:[%s322_s1] sm:$0x3]  ;;  %v66_v9 = vld [vmem:[%s322_s1 + $0x2] sm:$0x3] }
   0x3   :  { %v120_v8 = vsel %vm114_vm0, %v64_v2, 0.0  ;;  %v128_v10 = vand.u32 127, %v67_v0  ;;  %62 = vst.msk [vmem:[%s325_s4] sm:$0x3] %vm59_vm5, %v227_v22  ;;  %vm137_vm6 = vcmask 1041409  }
   0x4   :  { %v116_v11 = vsel %vm114_vm0, %v110_v3, 0.0  ;;  %v69_v12 = vsub.s32 0, %v68_v5  ;;  %v73_v13 = vsub.s32 1, %v68_v5  ;;  %v121_v14 = vsel %vm114_vm0, %v111_v6, 0.0 }
   0x5   :  { %v117_v15 = vadd.f32 %v116_v11, %v115_v4  ;;  %v269_v16 = vsub.s32 %v128_v10, %v68_v5  ;;  %v122_v21 = vadd.f32 %v121_v14, %v120_v8 }
   0x6   :  { %v70_v17 = vrot.slane %v65_v7, %v69_v12  ;;  %v74_v18 = vrot.slane %v65_v7, %v73_v13  ;;  %v78_v19 = vrot.slane %v66_v9, %v69_v12  ;;  %v82_v20 = vrot.slane %v66_v9, %v73_v13 }
   0x7   :  { %118 = vadd.xlane.f32.xlu0 %v117_v15 }
   0x8   :  { %vm85_vm1 = vcmp.eq.s32.totalorder %v70_v17, %v68_v5  ;;  %vm86_vm2 = vcmp.eq.s32.totalorder %v74_v18, %v68_v5  ;;  %vm87_vm3 = vcmp.eq.s32.totalorder %v78_v19, %v68_v5  ;;  %vm88_vm4 = vcmp.eq.s32.totalorder %v82_v20, %v68_v5  ;;  %v107_v48 = vld [vmem:[%s323_s2] sm:$0x3] }
   0x9   :  { %v220_v23 = vsel %vm85_vm1, 1.0, %v227_v22  ;;  %v221_v24 = vsel %vm86_vm2, 1.0, %v227_v22  ;;  %v222_v25 = vsel %vm87_vm3, 1.0, %v227_v22  ;;  %v223_v26 = vsel %vm88_vm4, 1.0, %v227_v22  ;;  %v143_v55 = vld [vmem:[%s324_s3] sm:$0x3] }
   0xa   :  { %v144_v27 = vsel %vm114_vm0, %v220_v23, 0.0  ;;  %v145_v28 = vsel %vm114_vm0, %v221_v24, 0.0  ;;  %v101_v29 = vcombine.low %v220_v23, %v221_v24  ;;  %v102_v30 = vcombine.low %v222_v25, %v223_v26  ;;  %v168_v63 = vld [vmem:[%s325_s4] sm:$0x3] }
   0xb   :  { %v146_v31 = vadd.f32 %v145_v28, %v144_v27  ;;  %123 = vadd.xlane.f32.xlu0 %v122_v21  ;;  %v149_v32 = vsel %vm114_vm0, %v222_v25, 0.0  ;;  %v150_v33 = vsel %vm114_vm0, %v223_v26, 0.0 }
   0xc   :  { %v106_v34 = vmul.f32 %v102_v30, %v64_v2  ;;  %v105_v35 = vmul.f32 %v101_v29, %v63_v1  ;;  %v151_v36 = vadd.f32 %v150_v33, %v149_v32 }
   0xd   :  { %147 = vadd.xlane.f32.xlu1 %v146_v31 }
   0xe   :  { %v172_v37 = vcombine.high %v106_v34, %v106_v34  ;;  %v180_v38 = vsel %vm114_vm0, %v106_v34, 0.0  ;;  %v171_v39 = vcombine.high %v105_v35, %v105_v35  ;;  %v175_v40 = vsel %vm114_vm0, %v105_v35, 0.0 }
  0x10   :  { %v181_v41 = vsel %vm114_vm0, %v172_v37, 0.0  ;;  %v176_v42 = vsel %vm114_vm0, %v171_v39, 0.0 }
  0x11   :  { %152 = vadd.xlane.f32.xlu1 %v151_v36  ;;  %v182_v43 = vadd.f32 %v181_v41, %v180_v38  ;;  %v177_v44 = vadd.f32 %v176_v42, %v175_v40 }
  0x13   :  { %178 = vadd.xlane.f32.xlu0 %v177_v44 }
  0x15   :  { %183 = vadd.xlane.f32.xlu1 %v182_v43 }
  0x94   :  { %v119_v45 = vpop.xlane.xlu0 %118 }
  0x95   :  { %v132_v46 = vrot.slane %v119_v45, %v269_v16 }
  0x98   :  { %v124_v47 = vpop.xlane.xlu0 %123 }
  0x99   :  { %v136_v49 = vrot.slane %v124_v47, %v269_v16 }
  0x9a   :  { %v148_v50 = vpop.xlane.xlu1 %147 }
  0x9b   :  { %v138_v51 = vsel %vm137_vm6, %v136_v49, %v132_v46  ;;  %v159_v54 = vrot.slane %v148_v50, %v269_v16 }
  0x9c   :  { %v140_v52 = vadd.f32 %v138_v51, %v107_v48 }
  0x9e   :  { %142 = vst.msk [vmem:[%s323_s2] sm:$0x3] %vm59_vm5, %v140_v52  ;;  %v153_v53 = vpop.xlane.xlu1 %152 }
  0x9f   :  { %v163_v56 = vrot.slane %v153_v53, %v269_v16 }
  0xa0   :  { %v179_v57 = vpop.xlane.xlu0 %178 }
  0xa1   :  { %v164_v58 = vsel %vm137_vm6, %v163_v56, %v159_v54  ;;  %v190_v59 = vrot.slane %v179_v57, %v269_v16 }
  0xa2   :  { %v166_v60 = vadd.f32 %v164_v58, %v143_v55  ;;  %v184_v61 = vpop.xlane.xlu1 %183 }
  0xa3   :  { %v194_v62 = vrot.slane %v184_v61, %v269_v16 }
  0xa4   :  { %167 = vst.msk [vmem:[%s324_s3] sm:$0x3] %vm59_vm5, %v166_v60 }
  0xa5   :  { %v195_v0 = vsel %vm137_vm6, %v194_v62, %v190_v59 }
  0xa6   :  { %v197_v1 = vadd.f32 %v195_v0, %v168_v63 }
  0xa8   :  { %198 = vst.msk [vmem:[%s325_s4] sm:$0x3] %vm59_vm5, %v197_v1 }

</bundles_post_ra>
